<compile_context>
chip_gen: v5e
topology: v5e:2x2
jax: 0.10.0
libtpu: 0.0.40
codegen_flags: <defaults>
</compile_context>

<pallas_src>
import math
import functools

import jax
import jax.numpy as jnp
from jax.experimental import pallas as pl
from jax.experimental.pallas import tpu as pltpu


def _m_scores_kernel(q_ref, k_ref, ksum_ref, mask_ref, m_ref, *,
                     tq, inv_l_k, resident_mask, qi_axis):
    """Per (b*h, q-tile): M_i = max_{sampled j} <Q_i,K_j> - (sum_{sampled j} <Q_i,K_j>)/L_K."""
    # q_ref:    (1, TQ, E)        bf16
    # k_ref:    (1, L_K, E)       bf16
    # ksum_ref: (1, TQ, E)        f32   (sum over sampled keys, with multiplicity)
    # mask_ref: (L_K, L_Q_pad) or (L_K, TQ) bf16 additive mask (0 / -1e30)
    # m_ref:    (1, 1, TQ)        f32   lane-dense output
    s_t = jax.lax.dot_general(                 # (L_K, TQ) = K @ Q^T on the MXU
        k_ref[0], q_ref[0],
        dimension_numbers=(((1,), (1,)), ((), ())),
        preferred_element_type=jnp.float32)

    if resident_mask:
        # Mask is a single fully-resident VMEM block shared across all grid steps;
        # slice the TQ columns of this q-tile in-kernel.
        col0 = pl.multiple_of(pl.program_id(qi_axis) * tq, 128)
        mask = mask_ref[:, pl.ds(col0, tq)]
    else:
        mask = mask_ref[...]

    # max over sampled keys: one add + one sublane max (duplicates irrelevant for max)
    samp_max = jnp.max(s_t + mask.astype(jnp.float32), axis=0, keepdims=True)   # (1, TQ)
    # sum over sampled keys (with multiplicity) via the precomputed Ksum: row-wise dot
    samp_sum = jnp.sum(q_ref[0].astype(jnp.float32) * ksum_ref[0], axis=-1)[None, :]  # (1, TQ)
    m_ref[...] = (samp_max - samp_sum * inv_l_k)[None]                           # (1, 1, TQ)


def _topk_scores_kernel(qr_ref, k_ref, o_ref):
    """Per head-group: scores = Q_reduce @ K^T (batched over G heads)."""
    # qr_ref: (G, u, E) bf16, k_ref: (G, L_K, E) bf16, o_ref: (G, u, L_K) f32
    o_ref[...] = jnp.einsum(                   # batched dot_general, contract last dims
        "gue,gke->guk", qr_ref[...], k_ref[...],
        preferred_element_type=jnp.float32)


def _tpu_vmem_bytes():
    try:
        return int(pltpu.get_tpu_info().vmem_capacity_bytes)
    except Exception:
        return 128 * 1024 * 1024


def _pick_q_tile(l_q_pad, l_k, d, tq_pref, vmem_limit):
    """Largest lane tile (<= tq_pref) dividing the padded L_Q that keeps the
    f32 (L_K, TQ) score tile + double-buffered inputs well under the VMEM limit."""
    for t in (512, 256, 128):
        if t > tq_pref or l_q_pad % t:
            continue
        est = (2 * l_k * t * 4                     # f32 s_t + f32 mask temp
               + 2 * (t * d * 2 + t * d * 4)       # double-buffered q (bf16) + Ksum (f32)
               + 2 * l_k * d * 2)                  # double-buffered K (bf16)
        if est <= vmem_limit // 2:
            return t
    return 128


def _pick_head_group(bh, l_k, d, u, budget_bytes, min_steps):
    """Largest G dividing BH under the per-step VMEM budget, keeping >= min_steps
    grid steps (so each TensorCore still gets cross-step double-buffering)."""
    best = 1
    for g in range(1, bh + 1):
        if bh % g:
            continue
        if g > 1 and bh // g < min_steps:
            continue
        per_step = 2 * (g * l_k * d * 2 + g * u * d * 2 + g * u * l_k * 4)
        if per_step > budget_bytes:
            continue
        best = g
    return best


def prob_att_forward(queries, keys, *, factor=2, rng_key=None,
                     compute_dtype=jnp.bfloat16, _debug_return_m=False):
    """Mirrors ProbAtt.forward: returns (scores_top, index)."""
    if rng_key is None:
        rng_key = jax.random.PRNGKey(0)

    B, L_Q, H, D = queries.shape
    _, L_K, _, _ = keys.shape
    BH = B * H

    # queries.transpose(2, 1) / keys.transpose(2, 1) -> (B, H, L, D) -> (BH, L, D)
    q = jnp.transpose(queries, (0, 2, 1, 3)).reshape(BH, L_Q, D).astype(compute_dtype)
    k = jnp.transpose(keys, (0, 2, 1, 3)).reshape(BH, L_K, D).astype(compute_dtype)

    U_part = min(factor * int(math.ceil(math.log(L_K))), L_K)
    u = min(factor * int(math.ceil(math.log(L_Q))), L_Q)

    # ---- generation-aware knobs ------------------------------------------------
    vmem_cap = _tpu_vmem_bytes()
    small_vmem = vmem_cap <= 96 * 1024 * 1024          # v7x-like (64 MiB per TC)
    tq_pref = 256 if small_vmem else 512               # v5e/v6e: bigger lane tile
    mask_resident_budget = (8 if small_vmem else 16) * 1024 * 1024
    k1_vmem_limit = (32 if small_vmem else 64) * 1024 * 1024
    k2_budget = (24 if small_vmem else 48) * 1024 * 1024
    k2_vmem_limit = (32 if small_vmem else 64) * 1024 * 1024
    k2_min_steps = 4 if small_vmem else 2              # 2 TCs share the parallel axis on v7x

    # ---- pad L_Q to a multiple of 128: lane-dense output, bounded q tile --------
    L_Q_pad = max(128, ((L_Q + 127) // 128) * 128)
    pad = L_Q_pad - L_Q
    q_pad = jnp.pad(q, ((0, 0), (0, pad), (0, 0))) if pad else q

    # torch.randint(L_K, (L_Q, sample_k)) equivalent; shared across (b, h) as in torch.
    index_sample = jax.random.randint(rng_key, (L_Q, U_part), 0, L_K, dtype=jnp.int32)
    # Sample-multiplicity matrix (padded query rows are all-zero).
    cnt = jnp.zeros((L_Q_pad, L_K), jnp.float32).at[
        jnp.arange(L_Q)[:, None], index_sample].add(1.0)
    # Additive mask (L_K, L_Q_pad): 0 where sampled, -1e30 otherwise (padded cols fully
    # masked -> M = -inf for padding, so top_k can never select a padded query).
    mask_t = jnp.where(cnt.T > 0.0, 0.0, -1e30).astype(compute_dtype)
    # Ksum[b, i, :] = sum over sampled keys (with multiplicity) of K[b, j, :].
    # Runs on the MXU via XLA in the wrapper; lets the kernel compute samp_sum as a
    # cheap row-wise q . Ksum dot instead of a full (L_K, TQ) VPU pass.
    ksum = jnp.einsum("qk,bkd->bqd", cnt, k.astype(jnp.float32))   # (BH, L_Q_pad, D) f32

    TQ = _pick_q_tile(L_Q_pad, L_K, D, tq_pref, k1_vmem_limit)
    n_qt = L_Q_pad // TQ

    # Fully-resident mask (fetched once) if it fits comfortably in VMEM.
    mask_resident = 2 * L_K * L_Q_pad * 2 <= mask_resident_budget

    kernel1 = functools.partial(
        _m_scores_kernel, tq=TQ, inv_l_k=1.0 / L_K,
        resident_mask=mask_resident, qi_axis=(1 if mask_resident else 0))

    if mask_resident:
        # grid (BH, n_qt): K fetched once per head, mask fetched exactly once.
        grid = (BH, n_qt)
        in_specs = [
            pl.BlockSpec((1, TQ, D), lambda b, qi: (b, qi, 0)),
            pl.BlockSpec((1, L_K, D), lambda b, qi: (b, 0, 0)),      # reused across qi
            pl.BlockSpec((1, TQ, D), lambda b, qi: (b, qi, 0)),
            pl.BlockSpec((L_K, L_Q_pad), lambda b, qi: (0, 0)),      # resident, DMA'd once
        ]
        out_spec = pl.BlockSpec((1, 1, TQ), lambda b, qi: (b, 0, qi))
    else:
        # Fallback: mask too big to keep resident -> make it the slow axis so its
        # block index is constant across the inner (b,h) axis; only K is re-fetched.
        grid = (n_qt, BH)
        in_specs = [
            pl.BlockSpec((1, TQ, D), lambda qi, b: (b, qi, 0)),
            pl.BlockSpec((1, L_K, D), lambda qi, b: (b, 0, 0)),
            pl.BlockSpec((1, TQ, D), lambda qi, b: (b, qi, 0)),
            pl.BlockSpec((L_K, TQ), lambda qi, b: (0, qi)),          # constant across b
        ]
        out_spec = pl.BlockSpec((1, 1, TQ), lambda qi, b: (b, 0, qi))

    # --- kernel 1: sparsity measure M per query ----------------------------------
    m = pl.pallas_call(
        kernel1,
        out_shape=jax.ShapeDtypeStruct((BH, 1, L_Q_pad), jnp.float32),
        grid=grid,
        in_specs=in_specs,
        out_specs=out_spec,
        compiler_params=pltpu.CompilerParams(
            dimension_semantics=("parallel", "parallel"),
            vmem_limit_bytes=k1_vmem_limit),
    )(q_pad, k, ksum, mask_t)
    m = m[:, 0, :]                                  # (BH, L_Q_pad), lane-dense store

    # TODO(synk): top-k (sort/select) has no clean Pallas TPU equivalent; use lax.top_k.
    _, m_top = jax.lax.top_k(m, u)                  # (BH, u) int32; padding never selected

    # Gather only the u (<< L_Q) selected Q rows per head -- tiny HBM traffic.
    q_red = jnp.take_along_axis(q_pad, m_top[..., None], axis=1)     # (BH, u, D) bf16

    G = _pick_head_group(BH, L_K, D, u, k2_budget, k2_min_steps)

    # --- kernel 2: scores_top = Q_reduce @ K^T, G heads batched per grid step -----
    scores = pl.pallas_call(
        _topk_scores_kernel,
        out_shape=jax.ShapeDtypeStruct((BH, u, L_K), jnp.float32),
        grid=(BH // G,),
        in_specs=[
            pl.BlockSpec((G, u, D), lambda g: (g, 0, 0)),
            pl.BlockSpec((G, L_K, D), lambda g: (g, 0, 0)),
        ],
        out_specs=pl.BlockSpec((G, u, L_K), lambda g: (g, 0, 0)),
        compiler_params=pltpu.CompilerParams(
            dimension_semantics=("parallel",),
            vmem_limit_bytes=k2_vmem_limit),
    )(q_red, k)

    scores_top = scores.reshape(B, H, u, L_K)
    index = m_top.reshape(B, H, u)                  # int32 (torch returns int64)
    if _debug_return_m:
        return scores_top, index, m[:, :L_Q].reshape(B, H, L_Q)
    return scores_top, index


if __name__ == "__main__":
    key = jax.random.PRNGKey(0)
    k_q, k_k, k_samp = jax.random.split(key, 3)

    B, L_Q, L_K, H, D = 2, 8, 8, 4, 32
    factor = 2
    queries = jax.random.normal(k_q, (B, L_Q, H, D), dtype=jnp.float32)
    keys = jax.random.normal(k_k, (B, L_K, H, D), dtype=jnp.float32)

    scores_top, index, m_dbg = prob_att_forward(
        queries, keys, factor=factor, rng_key=k_samp, _debug_return_m=True)
    scores_top = jax.block_until_ready(scores_top)
    index = jax.block_until_ready(index)
    m_dbg = jax.block_until_ready(m_dbg)

    # ---- sanity checks against a pure-JAX reference (same bf16 compute inputs) ----
    U_part = min(factor * int(math.ceil(math.log(L_K))), L_K)
    u = min(factor * int(math.ceil(math.log(L_Q))), L_Q)
    BH = B * H
    assert scores_top.shape == (B, H, u, L_K)
    assert index.shape == (B, H, u)
    assert bool(jnp.all((index >= 0) & (index < L_Q)))

    q_bh = jnp.transpose(queries, (0, 2, 1, 3)).reshape(BH, L_Q, D).astype(jnp.bfloat16)
    k_bh = jnp.transpose(keys, (0, 2, 1, 3)).reshape(BH, L_K, D).astype(jnp.bfloat16)
    qf = q_bh.astype(jnp.float32)
    kf = k_bh.astype(jnp.float32)

    # kernel-1 check: sampled sparsity measure M (same index_sample, gather formulation)
    index_sample = jax.random.randint(k_samp, (L_Q, U_part), 0, L_K, dtype=jnp.int32)
    k_samp_gather = kf[:, index_sample, :]                        # (BH, L_Q, U_part, E)
    qk_s = jnp.einsum("ble,blse->bls", qf, k_samp_gather)         # sampled scores
    ref_m = qk_s.max(-1) - qk_s.sum(-1) / L_K                     # (BH, L_Q)
    assert jnp.allclose(m_dbg.reshape(BH, L_Q), ref_m, rtol=1e-2, atol=1e-2)

    # kernel-2 check: scores for the kernel-chosen indices
    idx_bh = index.reshape(BH, u)
    q_red_ref = jnp.take_along_axis(qf, idx_bh[..., None], axis=1)  # (BH, u, E)
    ref_scores = jnp.einsum("bue,bke->buk", q_red_ref, kf)
    assert jnp.allclose(scores_top.reshape(BH, u, L_K), ref_scores, rtol=1e-2, atol=1e-2)

    print("KERNEL_OK")
</pallas_src>

<mosaic_0001>
module attributes {stable_mosaic.version = 11 : i64} {
  func.func @_m_scores_kernel(%arg0: i32, %arg1: i32, %arg2: memref<1x128x32xbf16, #tpu.memory_space<vmem>>, %arg3: memref<1x8x32xbf16, #tpu.memory_space<vmem>>, %arg4: memref<1x128x32xf32, #tpu.memory_space<vmem>>, %arg5: memref<8x128xbf16, #tpu.memory_space<vmem>>, %arg6: memref<1x1x128xf32, #tpu.memory_space<vmem>>) attributes {dimension_semantics = [#tpu.dimension_semantics<parallel>, #tpu.dimension_semantics<parallel>], iteration_bounds = array<i64: 8, 1>, scalar_prefetch = 0 : i64, scratch_operands = 0 : i64, tpu.core_type = #tpu.core_type<tc>, window_params = [{transform_indices = @transform_0, window_bounds = array<i64: 1, 128, 32>}, {transform_indices = @transform_1, window_bounds = array<i64: 1, 8, 32>}, {transform_indices = @transform_2, window_bounds = array<i64: 1, 128, 32>}, {pipeline_mode = #tpu.pipeline_mode<synchronous>, transform_indices = @transform_3, window_bounds = array<i64: 8, 128>}, {transform_indices = @transform_4, window_bounds = array<i64: 1, 1, 128>}]} {
    %c0 = arith.constant 0 : index
    %c0_0 = arith.constant 0 : index
    %c0_1 = arith.constant 0 : index
    %0 = vector.load %arg3[%c0, %c0_0, %c0_1] : memref<1x8x32xbf16, #tpu.memory_space<vmem>>, vector<1x8x32xbf16>
    %1 = vector.shape_cast %0 : vector<1x8x32xbf16> to vector<8x32xbf16>
    %c0_2 = arith.constant 0 : index
    %c0_3 = arith.constant 0 : index
    %c0_4 = arith.constant 0 : index
    %2 = vector.load %arg2[%c0_2, %c0_3, %c0_4] : memref<1x128x32xbf16, #tpu.memory_space<vmem>>, vector<1x128x32xbf16>
    %3 = vector.shape_cast %2 : vector<1x128x32xbf16> to vector<128x32xbf16>
    %cst = arith.constant dense<0.000000e+00> : vector<8x128xf32>
    %4 = tpu.matmul %1, %3, %cst {dimension_numbers = #tpu.dot_dimension_numbers<[1], [1], [0], [0], [0, 0, 1, 0], [], []>} : vector<8x32xbf16>, vector<128x32xbf16>, vector<8x128xf32> -> vector<8x128xf32>
    %c128_i32 = arith.constant 128 : i32
    %5 = arith.muli %arg1, %c128_i32 : i32
    %6 = tpu.assume_multiple %5, 128 : i32
    %c0_5 = arith.constant 0 : index
    %7 = arith.index_cast %6 : i32 to index
    %8 = vector.load %arg5[%c0_5, %7] : memref<8x128xbf16, #tpu.memory_space<vmem>>, vector<8x128xbf16>
    %9 = arith.extf %8 : vector<8x128xbf16> to vector<8x128xf32>
    %10 = arith.addf %4, %9 : vector<8x128xf32>
    %cst_6 = arith.constant dense<0xFF800000> : vector<128xf32>
    %11 = vector.multi_reduction <maximumf>, %10, %cst_6 [0] : vector<8x128xf32> to vector<128xf32>
    %12 = vector.shape_cast %11 : vector<128xf32> to vector<1x128xf32>
    %c0_7 = arith.constant 0 : index
    %c0_8 = arith.constant 0 : index
    %c0_9 = arith.constant 0 : index
    %13 = vector.load %arg2[%c0_7, %c0_8, %c0_9] : memref<1x128x32xbf16, #tpu.memory_space<vmem>>, vector<1x128x32xbf16>
    %14 = vector.shape_cast %13 : vector<1x128x32xbf16> to vector<128x32xbf16>
    %15 = arith.extf %14 : vector<128x32xbf16> to vector<128x32xf32>
    %c0_10 = arith.constant 0 : index
    %c0_11 = arith.constant 0 : index
    %c0_12 = arith.constant 0 : index
    %16 = vector.load %arg4[%c0_10, %c0_11, %c0_12] : memref<1x128x32xf32, #tpu.memory_space<vmem>>, vector<1x128x32xf32>
    %17 = vector.shape_cast %16 : vector<1x128x32xf32> to vector<128x32xf32>
    %18 = arith.mulf %15, %17 : vector<128x32xf32>
    %cst_13 = arith.constant dense<0.000000e+00> : vector<128xf32>
    %19 = vector.multi_reduction <add>, %18, %cst_13 [1] : vector<128x32xf32> to vector<128xf32>
    %20 = vector.shape_cast %19 : vector<128xf32> to vector<1x128xf32>
    %cst_14 = arith.constant 1.250000e-01 : f32
    %21 = vector.broadcast %cst_14 : f32 to vector<1x128xf32>
    %22 = arith.mulf %20, %21 : vector<1x128xf32>
    %23 = arith.subf %12, %22 : vector<1x128xf32>
    %24 = vector.shape_cast %23 : vector<1x128xf32> to vector<1x1x128xf32>
    %c0_15 = arith.constant 0 : index
    %c0_16 = arith.constant 0 : index
    %c0_17 = arith.constant 0 : index
    %25 = vector.load %arg6[%c0_15, %c0_16, %c0_17] : memref<1x1x128xf32, #tpu.memory_space<vmem>>, vector<1x1x128xf32>
    tpu.vector_store %arg6[%c0_15, %c0_16, %c0_17], %24 {strides = array<i32>} : memref<1x1x128xf32, #tpu.memory_space<vmem>>, vector<1x1x128xf32>,
    return
  }
  func.func @transform_0(%arg0: i32, %arg1: i32) -> (i32, i32, i32) {
    %c0_i32 = arith.constant 0 : i32
    %c0_i32_0 = arith.constant 0 : i32
    return %arg0, %arg1, %c0_i32 : i32, i32, i32
  }
  func.func @transform_1(%arg0: i32, %arg1: i32) -> (i32, i32, i32) {
    %c0_i32 = arith.constant 0 : i32
    %c0_i32_0 = arith.constant 0 : i32
    %c0_i32_1 = arith.constant 0 : i32
    return %arg0, %c0_i32, %c0_i32_0 : i32, i32, i32
  }
  func.func @transform_2(%arg0: i32, %arg1: i32) -> (i32, i32, i32) {
    %c0_i32 = arith.constant 0 : i32
    %c0_i32_0 = arith.constant 0 : i32
    return %arg0, %arg1, %c0_i32 : i32, i32, i32
  }
  func.func @transform_3(%arg0: i32, %arg1: i32) -> (i32, i32) {
    %c0_i32 = arith.constant 0 : i32
    %c0_i32_0 = arith.constant 0 : i32
    %c0_i32_1 = arith.constant 0 : i32
    return %c0_i32, %c0_i32_0 : i32, i32
  }
  func.func @transform_4(%arg0: i32, %arg1: i32) -> (i32, i32, i32) {
    %c0_i32 = arith.constant 0 : i32
    %c0_i32_0 = arith.constant 0 : i32
    return %arg0, %c0_i32, %arg1 : i32, i32, i32
  }
}

</mosaic_0001>

<bundles_post_ra>
// kernel: tpu_custom_call.1
= control target key start
LH: loop header
LB: loop body
LE: loop exit
PB: predicated region body
PF: predicated region fallthrough
CT: control target
= control target key end

     0   :  { %9 = vsyncpa [#allocation3], 0  ;;  %s1104_s0 = inlined_call_operand.vmem [shape: bf16[8,128,32], index: 0, kind: input, shape index: {}]   ;;  %s1105_s1 = inlined_call_operand.vmem [shape: bf16[8,8,32], index: 1, kind: input, shape index: {}]   ;;  %s1106_s2 = inlined_call_operand.vmem [shape: f32[8,128,32], index: 2, kind: input, shape index: {}]   ;;  %s1107_s3 = inlined_call_operand.vmem [shape: bf16[8,128], index: 3, kind: input, shape index: {}]   ;;  %s1108_s4 = inlined_call_operand.hbm [shape: f32[8,1,128], index: 4, kind: output, shape index: {}]  }
   0x1   :  { %11 = vsyncpa [#allocation3 + $0x1], 0  ;;  %s914_s15 = smov 0   ;;  %s916_s16 = smov 0  }
   0x2   :  { %s918_s17 = smov 0   ;;  %s920_s18 = smov 0  }
   0x3   :  { %s922_s19 = smov 0   ;;  %s924_s20 = smov 0  }
   0x4 LB: > { %s699_s21 = sadd.s32 4294967295, %s887_s20   ;;  %s700_s22 = sadd.s32 4294967294, %s887_s20   ;;  %s887_s20 = sphi %s924_s20, %s17_s20   ;;  %s883_s19 = sphi %s922_s19, %s1115_s19   ;;  %s879_s18 = sphi %s920_s18, %s1114_s18   ;;  %s875_s17 = sphi %s918_s17, %s1113_s17   ;;  %s871_s16 = sphi %s916_s16, %s1112_s16   ;;  %s867_s15 = sphi %s914_s15, %s1111_s15  }
   0x5   : > { %s29_s23 = sadd.s32 1, %s883_s19  ;;  %s141_s24 = sadd.s32 1, %s875_s17 }
   0x6   : > { %p31_p0 = scmp.ge.s32.totalorder %s29_s23, 8  ;;  %p151_p1 = scmp.ne.s32.totalorder %s875_s17, %s871_s16 }
   0x7   : > { %p152_p2 = scmp.eq.s32.totalorder %s699_s21, 7  ;;  %p157_p3 = scmp.ne.s32.totalorder %s871_s16, %s867_s15 }
   0x8   : > { %s1117_s23 = smov (%p31_p0, %s29_s23), 0  ;;  %p158_p5 = scmp.eq.s32.totalorder %s700_s22, 7 }
   0x9   : > { %p954_p4 = por %p152_p2, %p151_p1  ;;  %s136_s26 = ssub.s32 %s883_s19, %s1117_s23 }
   0xa   : > { %p703_p6 = scmp.ge.s32.totalorder %s887_s20, 1  ;;  %p139_p7 = scmp.eq.s32.totalorder %s136_s26, 0 }
   0xb   : > { %p961_p8 = por %p158_p5, %p157_p3  ;;  %p212_p9 = scmp.lt.s32.totalorder %s887_s20, 9 }
   0xc   : > { %s967_s28 = scalar_select %p139_p7, %s875_s17, %s141_s24  }
   0xd   : > { %p213_p10 = pnand %p703_p6, %p212_p9 }
   0xe   : > { %p255_p11 = scmp.lt.s32.totalorder (!%p213_p10), %s879_s18, 7  ;;  %s252_s26 = sand.u32 (!%p213_p10), 1, %s871_s16  }
   0xf   : > { %216 = sbr.rel (%p213_p10) target bundleno = 234 (0xea), region = 36  ;;  %s253_s6 = scalar_lea.vmem (!%p213_p10), [#allocation2], %s252_s26 }
  0x10   : > { %s595_s7 = sshll.u32 (!%p213_p10), %s253_s6, 4  ;;  %s584_s9 = scalar_lea.sflag (!%p213_p10), [#allocation3], %s252_s26  ;;  %s596_s7 = int_to_ptr.vmem [resolvable:$true] %s595_s7 }
  0x11   : > { %s829_s13 = scalar_lea.hbm (!%p213_p10), %s1108_s4, 8 }
  0x14   : > { %s971_s29 = scalar_select %p255_p11, %s879_s18, 7  ;;  %vm342_vm0 = vcmask 261120   ;;  %vm522_vm1 = vcmask 130112   ;;  %vm526_vm2 = vcmask 195712   ;;  %vm530_vm3 = vcmask 261312  }
  0x15   : > { %vm534_vm4 = vcmask 326912   ;;  %vm538_vm5 = vcmask 392512   ;;  %vm542_vm6 = vcmask 458112   ;;  %vm546_vm7 = vcmask 523712  }
  0x16   : > { %s744_s30 = sshll.u32 %s971_s29, 6  ;;  %s745_s5 = sshll.u32 %s971_s29, 7  ;;  %vm550_vm8 = vcmask 589312   ;;  %vm554_vm9 = vcmask 654912   ;;  %vm558_vm10 = vcmask 720512   ;;  %vm562_vm11 = vcmask 786112  }
  0x17   : > { %s978_s8 = scalar_lea.vmem %s1104_s0, %s744_s30  ;;  %s983_s11 = scalar_lea.vmem %s1106_s2, %s745_s5  ;;  %vm566_vm12 = vcmask 851712   ;;  %vm570_vm13 = vcmask 917312   ;;  %vm574_vm14 = vcmask 982912   ;;  %vm578_vm15 = vcmask 1048512  }
  0x18   : > { %v753_v0 = vld [vmem:[%s978_s8 + $0x38] sm:$0xff]  ;;  %v279_v1 = vld [vmem:[%s978_s8] sm:$0xff]   ;;  %v281_v3 = vld [vmem:[%s978_s8 + $0x8] sm:$0xff]   ;;  %s706_s12 = sshll.u32 %s971_s29, 2  ;;  %s593_s5 = scalar_lea.hbm %s1108_s4, %s879_s18 }
  0x19   : > { %v405_v2 = vld [vmem:[%s983_s11] sm:$0xff]  ;;  %v368_v4 = vsel %vm342_vm0, %v753_v0, 0  ;;  %v389_v5 = vunpack.c.l.bf16 %v279_v1  ;;  %v407_v6 = vld [vmem:[%s983_s11 + $0x10] sm:$0xff]  ;;  %v391_v9 = vunpack.c.l.bf16 %v281_v3  ;;  %v390_v13 = vunpack.c.h.bf16 %v279_v1  ;;  %v406_v16 = vld [vmem:[%s983_s11 + $0x8] sm:$0xff]  ;;  %s267_s21 = scalar_lea.vmem %s1105_s1, %s706_s12 }
  0x1a   : > { %v283_v7 = vld [vmem:[%s978_s8 + $0x10] sm:$0xff]   ;;  %v409_v8 = vld [vmem:[%s983_s11 + $0x20] sm:$0xff]  ;;  %370 = vmatpush.bf16.xpose.msra.mxu0 %v368_v4  ;;  %v392_v17 = vunpack.c.h.bf16 %v281_v3  ;;  %v408_v20 = vld [vmem:[%s983_s11 + $0x18] sm:$0xff] }
  0x1b   : > { %v393_v10 = vunpack.c.l.bf16 %v283_v7  ;;  %v752_v11 = vld [vmem:[%s978_s8 + $0x30] sm:$0xff]  ;;  %v421_v12 = vmul.f32 %v405_v2, %v389_v5  ;;  %v423_v14 = vmul.f32 %v407_v6, %v391_v9  ;;  %v394_v18 = vunpack.c.h.bf16 %v283_v7  ;;  %v410_v21 = vld [vmem:[%s983_s11 + $0x28] sm:$0xff]  ;;  %v285_v28 = vld [vmem:[%s978_s8 + $0x18] sm:$0xff]  }
  0x1c   : > { %v365_v24 = vsel %vm342_vm0, %v752_v11, 0  ;;  %v422_v25 = vmul.f32 %v406_v16, %v390_v13  ;;  %v424_v26 = vmul.f32 %v408_v20, %v392_v17  ;;  %v287_v29 = vld [vmem:[%s978_s8 + $0x20] sm:$0xff]   ;;  %v751_v30 = vld [vmem:[%s978_s8 + $0x28] sm:$0xff]  ;;  %v395_v32 = vunpack.c.l.bf16 %v285_v28  ;;  %v411_v35 = vld [vmem:[%s983_s11 + $0x30] sm:$0xff] }
  0x1d   : > { %v425_v15 = vmul.f32 %v409_v8, %v393_v10  ;;  %v437_v19 = vsel %vm342_vm0, %v421_v12, 0.0  ;;  %v443_v22 = vsel %vm342_vm0, %v423_v14, 0.0  ;;  %v426_v27 = vmul.f32 %v410_v21, %v394_v18  ;;  %v412_v38 = vld [vmem:[%s983_s11 + $0x38] sm:$0xff]  ;;  %v413_v39 = vld [vmem:[%s983_s11 + $0x40] sm:$0xff]  ;;  %v289_v44 = vld [vmem:[%s978_s8 + $0x28] sm:$0xff]  }
  0x1e   : > { %438 = vadd.xlane.f32.xlu0 %v437_v19  ;;  %444 = vadd.xlane.f32.xlu1 %v443_v22  ;;  %v440_v31 = vsel %vm342_vm0, %v422_v25, 0.0  ;;  %v446_v33 = vsel %vm342_vm0, %v424_v26, 0.0  ;;  %v396_v36 = vunpack.c.h.bf16 %v285_v28  ;;  %v397_v37 = vunpack.c.l.bf16 %v287_v29  ;;  %v750_v45 = vld [vmem:[%s978_s8 + $0x20] sm:$0xff]  ;;  %v414_v50 = vld [vmem:[%s983_s11 + $0x48] sm:$0xff]  ;;  %v415_v53 = vld [vmem:[%s983_s11 + $0x50] sm:$0xff] }
  0x1f   : > { %v449_v23 = vsel %vm342_vm0, %v425_v15, 0.0  ;;  %v452_v34 = vsel %vm342_vm0, %v426_v27, 0.0  ;;  %v362_v40 = vsel %vm342_vm0, %v751_v30, 0  ;;  %v427_v41 = vmul.f32 %v411_v35, %v395_v32  ;;  %v416_v54 = vld [vmem:[%s983_s11 + $0x58] sm:$0xff]  ;;  %v291_v59 = vld [vmem:[%s978_s8 + $0x30] sm:$0xff]   ;;  %v417_v2 = vld [vmem:[%s983_s11 + $0x60] sm:$0xff] }
  0x20   : > { %450 = vadd.xlane.f32.xlu2 %v449_v23  ;;  %v428_v42 = vmul.f32 %v412_v38, %v396_v36  ;;  %v429_v43 = vmul.f32 %v413_v39, %v397_v37  ;;  %v398_v47 = vunpack.c.h.bf16 %v287_v29  ;;  %v399_v51 = vunpack.c.l.bf16 %v289_v44  ;;  %v293_v60 = vld [vmem:[%s978_s8 + $0x38] sm:$0xff]   ;;  %v418_v5 = vld [vmem:[%s983_s11 + $0x68] sm:$0xff]  ;;  %v419_v6 = vld [vmem:[%s983_s11 + $0x70] sm:$0xff] }
  0x21   : > { %v455_v46 = vsel %vm342_vm0, %v427_v41, 0.0  ;;  %v400_v52 = vunpack.c.h.bf16 %v289_v44  ;;  %v359_v55 = vsel %vm342_vm0, %v750_v45, 0  ;;  %v749_v61 = vld [vmem:[%s978_s8 + $0x18] sm:$0xff]  ;;  %v401_v63 = vunpack.c.l.bf16 %v291_v59  ;;  %v748_v11 = vld [vmem:[%s978_s8 + $0x10] sm:$0xff]  ;;  %v747_v19 = vld [vmem:[%s978_s8 + $0x8] sm:$0xff] }
  0x22   : > { %371 = vmatpush.bf16.xpose.msra.mxu0 %v365_v24  ;;  %v458_v48 = vsel %vm342_vm0, %v428_v42, 0.0  ;;  %v461_v49 = vsel %vm342_vm0, %v429_v43, 0.0  ;;  %v430_v56 = vmul.f32 %v414_v50, %v398_v47  ;;  %v431_v57 = vmul.f32 %v415_v53, %v399_v51  ;;  %v420_v16 = vld [vmem:[%s983_s11 + $0x78] sm:$0xff]  ;;  %v746_v22 = vld [vmem:[%s978_s8] sm:$0xff]  ;;  %s597_s8 = sshll.u32 %s593_s5, 4  ;;  %s598_s8 = int_to_ptr.hbm [resolvable:$true] %s597_s8 }
  0x23   : > { %v432_v58 = vmul.f32 %v416_v54, %v400_v52  ;;  %v402_v3 = vunpack.c.h.bf16 %v291_v59  ;;  %v403_v4 = vunpack.c.l.bf16 %v293_v60  ;;  %v356_v7 = vsel %vm342_vm0, %v749_v61, 0  ;;  %v278_v24 = vld [vmem:[%s267_s21] sm:$0xf]  ;;  %s823_s10 = sshra.s32 %s598_s8, 4  ;;  %s824_s10 = int_to_ptr.hbm [resolvable:$true] %s823_s10 }
  0x24   : > { %v464_v62 = vsel %vm342_vm0, %v430_v56, 0.0  ;;  %v467_v0 = vsel %vm342_vm0, %v431_v57, 0.0  ;;  %v433_v8 = vmul.f32 %v417_v2, %v401_v63  ;;  %v404_v13 = vunpack.c.h.bf16 %v293_v60  ;;  %s825_s11 = scalar_lea.hbm %s824_s10, 1  ;;  %p830_p1 = scmp.lt.s32.totalorder %s824_s10, %s1108_s4 }
  0x25   : > { %v470_v1 = vsel %vm342_vm0, %v432_v58, 0.0  ;;  %v434_v9 = vmul.f32 %v418_v5, %v402_v3  ;;  %v435_v10 = vmul.f32 %v419_v6, %v403_v4  ;;  %v353_v17 = vsel %vm342_vm0, %v748_v11, 0  ;;  %p826_p12 = scmp.ne.s32.totalorder %s824_s10, %s825_s11  ;;  %p831_p2 = scmp.lt.s32.totalorder %s829_s13, %s825_s11 }
  0x26   : > { %441 = vadd.xlane.f32.xlu0 %v440_v31  ;;  %447 = vadd.xlane.f32.xlu1 %v446_v33  ;;  %v473_v12 = vsel %vm342_vm0, %v433_v8, 0.0  ;;  %v436_v18 = vmul.f32 %v420_v16, %v404_v13  ;;  %v350_v21 = vsel %vm342_vm0, %v747_v19, 0  ;;  %v347_v23 = vsel %vm342_vm0, %v746_v22, 0 }
  0x27   : > { %v476_v14 = vsel %vm342_vm0, %v434_v9, 0.0  ;;  %v479_v15 = vsel %vm342_vm0, %v435_v10, 0.0  ;;  %v517_v26 = vlaneseq  ;;  %p827_p13 = pnand %p826_p12, %p954_p4  ;;  %p832_p3 = por %p831_p2, %p830_p1 }
  0x28   : > { %453 = vadd.xlane.f32.xlu2 %v452_v34  ;;  %v482_v20 = vsel %vm342_vm0, %v436_v18, 0.0 }
  0x29   : > { %v1046_v28 = vand.u32 127, %v517_v26  ;;  %p828_p0 = pneg %p827_p13 }
  0x2a   : > { %372 = vmatpush.bf16.xpose.msra.mxu0 %v362_v40 }
  0x2b   : > { %v520_v32 = vadd.s32 4294967288, %v1046_v28  ;;  %v524_v34 = vadd.s32 4294967280, %v1046_v28  ;;  %v528_v39 = vadd.s32 4294967272, %v1046_v28  ;;  %v532_v44 = vadd.s32 4294967264, %v1046_v28  ;;  %p833_p5 = pnand %p832_p3, %p828_p0 }
  0x2c   : > { %v540_v54 = vadd.s32 4294967248, %v1046_v28  ;;  %v544_v59 = vadd.s32 4294967240, %v1046_v28  ;;  %v552_v5 = vadd.s32 4294967224, %v1046_v28  ;;  %v556_v10 = vadd.s32 4294967216, %v1046_v28 }
  0x2d   : > { %v568_v26 = vadd.s32 4294967192, %v1046_v28 }
  0x2e   : > { %456 = vadd.xlane.f32.xlu0 %v455_v46  ;;  %459 = vadd.xlane.f32.xlu1 %v458_v48 }
  0x30   : > { %462 = vadd.xlane.f32.xlu2 %v461_v49  ;;  %v536_v49 = vadd.s32 4294967256, %v1046_v28 }
  0x32   : > { %373 = vmatpush.bf16.xpose.msra.mxu0 %v359_v55 }
  0x36   : > { %465 = vadd.xlane.f32.xlu0 %v464_v62  ;;  %468 = vadd.xlane.f32.xlu1 %v467_v0  ;;  %v548_v0 = vadd.s32 4294967232, %v1046_v28 }
  0x38   : > { %471 = vadd.xlane.f32.xlu2 %v470_v1 }
  0x3a   : > { %374 = vmatpush.bf16.xpose.msra.mxu0 %v356_v7 }
  0x3e   : > { %474 = vadd.xlane.f32.xlu0 %v473_v12  ;;  %477 = vadd.xlane.f32.xlu1 %v476_v14 }
  0x40   : > { %480 = vadd.xlane.f32.xlu2 %v479_v15  ;;  %v560_v15 = vadd.s32 4294967208, %v1046_v28 }
  0x42   : > { %375 = vmatpush.bf16.xpose.msra.mxu0 %v353_v17  ;;  %v300_v17 = vld [vmem:[%s1107_s3] sm:$0xf] }
  0x46   : > { %483 = vadd.xlane.f32.xlu0 %v482_v20  ;;  %v564_v20 = vadd.s32 4294967200, %v1046_v28 }
  0x4a   : > { %376 = vmatpush.bf16.xpose.msra.mxu0 %v350_v21 }
  0x52   : > { %377 = vmatpush.bf16.xpose.msra.mxu0 %v347_v23  ;;  %v301_v23 = vunpack.c.l.bf16 %v300_v17 }
  0x59   : > { %741 = vmatmul.msk.bf16.vlgmr.msra.gmra.mxu0 %vm342_vm0, %v278_v24 }
  0x91   : > { %v439_v25 = vpop.xlane.xlu0 %438  ;;  %v445_v27 = vpop.xlane.xlu1 %444 }
  0x92   : > { %v485_v31 = vmul.f32 0.125, %v439_v25  ;;  %v487_v35 = vmul.f32 0.125, %v445_v27 }
  0x93   : > { %v451_v29 = vpop.xlane.xlu2 %450 }
  0x94   : > { %v519_v37 = vperm.slane %v485_v31, %v1046_v28  ;;  %v525_v42 = vperm.slane %v487_v35, %v524_v34  ;;  %v489_v45 = vmul.f32 0.125, %v451_v29  ;;  %v572_v34 = vadd.s32 4294967184, %v1046_v28 }
  0x96   : > { %v533_v51 = vperm.slane %v489_v45, %v532_v44 }
  0x99   : > { %v442_v30 = vpop.xlane.xlu0 %441  ;;  %v448_v36 = vpop.xlane.xlu1 %447 }
  0x9a   : > { %v486_v33 = vmul.f32 0.125, %v442_v30  ;;  %v488_v40 = vmul.f32 0.125, %v448_v36 }
  0x9b   : > { %v454_v41 = vpop.xlane.xlu2 %453 }
  0x9c   : > { %v521_v38 = vperm.slane %v486_v33, %v520_v32  ;;  %v529_v47 = vperm.slane %v488_v40, %v528_v39  ;;  %v490_v50 = vmul.f32 0.125, %v454_v41  ;;  %v576_v41 = vadd.s32 4294967176, %v1046_v28 }
  0x9e   : > { %v523_v43 = vsel %vm522_vm1, %v521_v38, %v519_v37  ;;  %v537_v56 = vperm.slane %v490_v50, %v536_v49 }
  0x9f   : > { %v527_v48 = vsel %vm526_vm2, %v525_v42, %v523_v43 }
  0xa0   : > { %v531_v53 = vsel %vm530_vm3, %v529_v47, %v527_v48 }
  0xa1   : > { %v457_v46 = vpop.xlane.xlu0 %456  ;;  %v460_v52 = vpop.xlane.xlu1 %459  ;;  %v535_v58 = vsel %vm534_vm4, %v533_v51, %v531_v53 }
  0xa2   : > { %v491_v55 = vmul.f32 0.125, %v457_v46  ;;  %v492_v60 = vmul.f32 0.125, %v460_v52  ;;  %v539_v63 = vsel %vm538_vm5, %v537_v56, %v535_v58 }
  0xa3   : > { %v463_v57 = vpop.xlane.xlu2 %462 }
  0xa4   : > { %v541_v61 = vperm.slane %v491_v55, %v540_v54  ;;  %v493_v1 = vmul.f32 0.125, %v463_v57  ;;  %v545_v2 = vperm.slane %v492_v60, %v544_v59 }
  0xa6   : > { %v543_v3 = vsel %vm542_vm6, %v541_v61, %v539_v63  ;;  %v549_v7 = vperm.slane %v493_v1, %v548_v0 }
  0xa7   : > { %v547_v8 = vsel %vm546_vm7, %v545_v2, %v543_v3 }
  0xa8   : > { %v551_v13 = vsel %vm550_vm8, %v549_v7, %v547_v8 }
  0xa9   : > { %v466_v62 = vpop.xlane.xlu0 %465  ;;  %v469_v4 = vpop.xlane.xlu1 %468 }
  0xaa   : > { %v494_v6 = vmul.f32 0.125, %v466_v62  ;;  %v495_v11 = vmul.f32 0.125, %v469_v4 }
  0xab   : > { %v472_v9 = vpop.xlane.xlu2 %471 }
  0xac   : > { %v553_v12 = vperm.slane %v494_v6, %v552_v5  ;;  %v496_v16 = vmul.f32 0.125, %v472_v9  ;;  %v557_v18 = vperm.slane %v495_v11, %v556_v10 }
  0xae   : > { %v555_v19 = vsel %vm554_vm9, %v553_v12, %v551_v13  ;;  %v561_v24 = vperm.slane %v496_v16, %v560_v15 }
  0xaf   : > { %v559_v25 = vsel %vm558_vm10, %v557_v18, %v555_v19 }
  0xb0   : > { %v563_v33 = vsel %vm562_vm11, %v561_v24, %v559_v25 }
  0xb1   : > { %v475_v14 = vpop.xlane.xlu0 %474  ;;  %v478_v22 = vpop.xlane.xlu1 %477 }
  0xb2   : > { %v497_v21 = vmul.f32 0.125, %v475_v14  ;;  %v498_v27 = vmul.f32 0.125, %v478_v22 }
  0xb3   : > { %v481_v29 = vpop.xlane.xlu2 %480 }
  0xb4   : > { %v565_v31 = vperm.slane %v497_v21, %v564_v20  ;;  %v499_v35 = vmul.f32 0.125, %v481_v29  ;;  %v569_v38 = vperm.slane %v498_v27, %v568_v26 }
  0xb6   : > { %v567_v39 = vsel %vm566_vm12, %v565_v31, %v563_v33  ;;  %v573_v43 = vperm.slane %v499_v35, %v572_v34 }
  0xb7   : > { %v571_v45 = vsel %vm570_vm13, %v569_v38, %v567_v39 }
  0xb8   : > { %v575_v49 = vsel %vm574_vm14, %v573_v43, %v571_v45 }
  0xb9   : > { %v484_v36 = vpop.xlane.xlu0 %483 }
  0xba   : > { %v500_v42 = vmul.f32 0.125, %v484_v36 }
  0xbc   : > { %v577_v48 = vperm.slane %v500_v42, %v576_v41 }
  0xbe   : > { %v579_v51 = vsel %vm578_vm15, %v577_v48, %v575_v49 }
  0xd6   : > { %v379_v30 = vpop.f32.mrf.mxu0 }
  0xd7   : > { %v380_v32 = vadd.f32 %v379_v30, %v301_v23 }
  0xd9   : > { %v383_v37 = vrot.slane %v380_v32, 4 }
  0xdb   : > { %v384_v40 = vmax.f32 %v380_v32, %v383_v37 }
  0xdd   : > { %v385_v44 = vrot.slane %v384_v40, 2 }
  0xde   : > { %v381_v46 = vpop.f32.mrf.mxu0 }
  0xdf   : > { %v386_v47 = vmax.f32 %v384_v40, %v385_v44 }
  0xe1   : > { %v387_v50 = vrot.slane %v386_v47, 1 }
  0xe3   : > { %v388_v28 = vmax.f32 %v386_v47, %v387_v50 }
  0xe5   : > { %v581_v52 = vsub.f32 %v388_v28, %v579_v51 }
  0xe7   : > { %582 = vst [vmem:[%s253_s6] sm:$0x1] %v581_v52 }
  0xe8   : > { %836 = shalt.err (!%p833_p5)
}
  0xe9   : > { %754 = dma.vmem_to_hbm [thread:$0]  (%p954_p4), %s596_s7, 16, %s598_s8, %s584_s9  }
  0xea PF: > { %p760_p6 = scmp.ge.s32.totalorder %s887_s20, 2  ;;  %s609_s22 = sand.u32 1, %s867_s15  }
  0xeb   : > { %s610_s24 = scalar_lea.sflag [#allocation3], %s609_s22 }
  0xec   : > { %p757_p7 = pnand %p760_p6, %p961_p8 }
  0xee   : > { %p758_p9 = pneg %p757_p7 }
  0xf0   : > { %862 = dma.done.wait (%p758_p9), %s610_s24, 16  }
  0xf1   : > { %864 = vsyncadd (%p758_p9), %s610_s24, 4294967280  ;;  %s17_s20 = sadd.s32 1, %s887_s20   ;;  %s1111_s15 = smov %s871_s16 }
  0xf2   : > { %p14_p10 = scmp.ge.s32.totalorder %s17_s20, 10   ;;  %s1112_s16 = smov %s875_s17 }
  0xf3   : > { %s1113_s17 = smov %s967_s28  ;;  %s1114_s18 = smov %s883_s19 }
  0xf4   : > { %s1115_s19 = smov %s1117_s23  ;;  %16 = sbr.rel (!%p14_p10) target bundleno = 4 (0x4), region = 78 }
  0xf9   :  { %615 = vsyncpa [#allocation3], 1 }
  0xfa   :  { %617 = vsyncpa [#allocation3 + $0x1], 1 }

</bundles_post_ra>
